<compile_context>
chip_gen: v5e
topology: v5e:2x2
jax: 0.10.0
libtpu: 0.0.40
codegen_flags: <defaults>
</compile_context>

<pallas_src>
import math
from functools import lru_cache, partial

import jax
import jax.numpy as jnp
import numpy as np
from jax.experimental import pallas as pl
from jax.experimental.pallas import tpu as pltpu


# ---------------------------------------------------------------------------
# Generation-aware knobs
# ---------------------------------------------------------------------------
def _round_up(x, m):
    return ((x + m - 1) // m) * m


@lru_cache(maxsize=None)
def _vmem_limit_bytes():
    """Scoped-VMEM limit derived per TPU generation.

    v5e/v6e have 128 MiB physical VMEM -> 64 MiB scoped; v7x has only 64 MiB
    per TensorCore -> cap at 48 MiB to leave room for Mosaic internal scratch.
    """
    cap = None
    try:
        cap = getattr(pltpu.get_tpu_info(), "vmem_capacity_bytes", None)
    except Exception:
        cap = None
    if cap is not None and cap <= 80 * 1024 * 1024:   # v7x-class part
        return 48 * 1024 * 1024
    return 64 * 1024 * 1024


@lru_cache(maxsize=None)
def _is_v5():
    try:
        kind = jax.devices()[0].device_kind.lower()
    except Exception:
        return False
    return "v5" in kind


def _default_linear_tiles():
    # Bigger M tile on 128 MiB-VMEM parts (v5e/v6e); 512-class tiles on v7x.
    if _vmem_limit_bytes() >= 64 * 1024 * 1024:
        return 1024, 512, 512
    return 512, 512, 512


def _pick_tile(dim, target, align):
    """Largest tile <= target that is a multiple of `align` and divides the
    `align`-rounded dim -> no jnp.pad HBM copy when dim is already aligned."""
    dim_a = _round_up(max(dim, 1), align)
    t = min(target, dim_a)
    t -= t % align
    t = max(t, align)
    while dim_a % t != 0:
        t -= align
    return t


# ---------------------------------------------------------------------------
# Multi-output tiled linear (x @ w_i [+ b_i] for several weights, one pass)
# ---------------------------------------------------------------------------
@lru_cache(maxsize=None)
def _make_multi_matmul_kernel(n_out, with_bias):
    def kernel(*refs):
        x_ref = refs[0]
        w_refs = refs[1:1 + n_out]
        pos = 1 + n_out
        b_refs = refs[pos:pos + n_out] if with_bias else ()
        pos += n_out if with_bias else 0
        o_refs = refs[pos:pos + n_out]
        acc_refs = refs[pos + n_out:pos + 2 * n_out]

        @pl.when(pl.program_id(2) == 0)
        def _init():
            for acc in acc_refs:
                acc[...] = jnp.zeros(acc.shape, acc.dtype)

        # bf16 MXU operands, f32 accumulation (2-3x MXU throughput vs f32
        # passes on v6e/v7x); x tile is read/cast once for all n_out matmuls.
        x = x_ref[...].astype(jnp.bfloat16)
        for w_ref, acc in zip(w_refs, acc_refs):
            acc[...] += jnp.dot(x, w_ref[...].astype(jnp.bfloat16),
                                preferred_element_type=jnp.float32)

        @pl.when(pl.program_id(2) == pl.num_programs(2) - 1)
        def _store():
            for idx in range(n_out):
                r = acc_refs[idx][...]
                if with_bias:
                    r = r + b_refs[idx][...].astype(jnp.float32)
                o_refs[idx][...] = r.astype(o_refs[idx].dtype)

    return kernel


def pallas_multi_linear(x2d, ws, bs=None, *, tiles=None):
    """x2d: (M, K); ws: list of (K, N) weights (same N); bs: optional list of
    (N,) biases.  All projections are computed in ONE pipelined pallas_call so
    x is streamed from HBM once, and each projection is a separate output
    array (no wrapper-side slicing).  Returns a tuple of (M, N) arrays."""
    M, K = x2d.shape
    n_out = len(ws)
    N = ws[0].shape[1]
    for w in ws:
        assert w.shape == (K, N)
    with_bias = bs is not None
    if with_bias:
        assert len(bs) == n_out

    tm, tn, tk = tiles if tiles is not None else _default_linear_tiles()
    tm = _pick_tile(M, tm, 8)
    tn = _pick_tile(N, tn, 128)
    tk = _pick_tile(K, tk, 128)
    Mp, Kp, Np = _round_up(M, tm), _round_up(K, tk), _round_up(N, tn)

    # Padding only happens when dims are not (8,128)-aligned (the tile picker
    # above avoids it for the usual 128-multiple transformer dims).  Zero K/N
    # padding contributes nothing; padded M rows are sliced off below.
    xp = x2d if (Mp, Kp) == (M, K) else jnp.pad(x2d, ((0, Mp - M), (0, Kp - K)))
    wps = [w if (Kp, Np) == (K, N) else jnp.pad(w, ((0, Kp - K), (0, Np - N)))
           for w in ws]
    operands = [xp] + wps
    if with_bias:
        operands += [(b if Np == N else jnp.pad(b, (0, Np - N))).reshape(1, Np)
                     for b in bs]

    grid = (Mp // tm, Np // tn, Kp // tk)
    x_spec = pl.BlockSpec((tm, tk), lambda i, j, k: (i, k))
    w_spec = pl.BlockSpec((tk, tn), lambda i, j, k: (k, j))
    b_spec = pl.BlockSpec((1, tn), lambda i, j, k: (0, j))
    o_spec = pl.BlockSpec((tm, tn), lambda i, j, k: (i, j))

    in_specs = [x_spec] + [w_spec] * n_out
    if with_bias:
        in_specs += [b_spec] * n_out

    outs = pl.pallas_call(
        _make_multi_matmul_kernel(n_out, with_bias),
        out_shape=tuple(jax.ShapeDtypeStruct((Mp, Np), x2d.dtype)
                        for _ in range(n_out)),
        grid_spec=pltpu.PrefetchScalarGridSpec(
            num_scalar_prefetch=0, grid=grid,
            in_specs=in_specs,
            out_specs=tuple([o_spec] * n_out),
            scratch_shapes=[pltpu.VMEM((tm, tn), jnp.float32)] * n_out),
        compiler_params=pltpu.CompilerParams(
            # i/j are the "parallel" axes that get sharded across the two
            # v7x TensorCores; the K reduction stays innermost/"arbitrary".
            dimension_semantics=("parallel", "parallel", "arbitrary"),
            vmem_limit_bytes=_vmem_limit_bytes()),
    )(*operands)

    if not isinstance(outs, (tuple, list)):
        outs = (outs,)
    if (Mp, Np) != (M, N):
        outs = tuple(o[:M, :N] for o in outs)
    return tuple(outs)


# ---------------------------------------------------------------------------
# Flash-style attention kernel (online softmax over KV tiles)
# ---------------------------------------------------------------------------
def _flash_attn_kernel(q_ref, k_ref, v_ref, o_ref, m_sc, l_sc, acc_sc,
                       *, scale, tk, nk_valid):
    kv = pl.program_id(2)

    @pl.when(kv == 0)
    def _init():
        m_sc[...] = jnp.full(m_sc.shape, -jnp.inf, m_sc.dtype)
        l_sc[...] = jnp.zeros(l_sc.shape, l_sc.dtype)
        acc_sc[...] = jnp.zeros(acc_sc.shape, acc_sc.dtype)

    # bf16 MXU operands, f32 accumulation.  The 1/sqrt(d) scale is folded into
    # the (tq, D) q tile (cheaper than scaling the (tq, tk) score tile).
    q = (q_ref[0] * scale).astype(jnp.bfloat16)     # (tq, D)
    k = k_ref[0].astype(jnp.bfloat16)               # (tk, D)
    v = v_ref[0].astype(jnp.bfloat16)               # (tk, D)

    # Contract over D on both operands -> no XLU transpose of k.
    s = jax.lax.dot_general(q, k, (((1,), (1,)), ((), ())),
                            preferred_element_type=jnp.float32)  # (tq, tk) f32

    def update(s):
        # Online softmax update; all softmax math stays in f32.
        m_prev = m_sc[...]
        m_new = jnp.maximum(m_prev, s.max(axis=-1, keepdims=True))
        alpha = jnp.exp(m_prev - m_new)
        p = jnp.exp(s - m_new)                      # in [0, 1] -> bf16-safe
        l_sc[...] = alpha * l_sc[...] + p.sum(axis=-1, keepdims=True)
        acc_sc[...] = alpha * acc_sc[...] + jnp.dot(
            p.astype(jnp.bfloat16), v, preferred_element_type=jnp.float32)
        m_sc[...] = m_new

    if nk_valid is None:
        update(s)
    else:
        last = pl.num_programs(2) - 1

        @pl.when(kv < last)           # interior tiles: no padded keys, no mask
        def _interior():
            update(s)

        @pl.when(kv == last)          # only the final KV tile can have padding
        def _tail():
            col = kv * tk + jax.lax.broadcasted_iota(jnp.int32, s.shape, 1)
            # The score matrix is f32, so -1e30 is a safe "-inf" sentinel
            # (would need revisiting if scores ever moved to bf16).
            update(jnp.where(col < nk_valid, s, -1e30))

    @pl.when(kv == pl.num_programs(2) - 1)
    def _store():
        # Exact reciprocal (once per q-tile, negligible cost vs approx).
        o_ref[0] = (acc_sc[...] / l_sc[...]).astype(o_ref.dtype)


def _kv_index_map(b, qi, ki):
    return (b, ki, 0)


def _kv_block_spec(tk, D):
    # 3-deep buffering on K/V hides the small per-tile DMAs behind the short
    # per-tile compute on v5e's lower HBM bandwidth; default double-buffering
    # elsewhere.
    if _is_v5() and hasattr(pl, "Buffered"):
        try:
            return pl.BlockSpec((1, tk, D), _kv_index_map,
                                pipeline_mode=pl.Buffered(3))
        except TypeError:
            pass
    return pl.BlockSpec((1, tk, D), _kv_index_map)


def pallas_flash_attention(q, k, v, scale, *, tq=1024, tk=512):
    """q: (BH, Nq, D), k/v: (BH, Nk, D) -> (BH, Nq, D)."""
    BH, Nq, D = q.shape
    _, Nk, _ = k.shape

    # Large q tile => K/V are re-streamed from HBM fewer (Nq/tq) times; VMEM
    # cost is only O(tq*(D+tk)) f32, which is tiny at dim_head <= 128.
    tq = _pick_tile(Nq, tq, 8)
    tk = _pick_tile(Nk, tk, 8)
    Nq_p = _round_up(Nq, tq)
    Nk_p = _round_up(Nk, tk)

    if Nq_p != Nq:       # zero-padded query rows are sliced off afterwards
        q = jnp.pad(q, ((0, 0), (0, Nq_p - Nq), (0, 0)))
    if Nk_p != Nk:       # padded keys are masked to -inf inside the kernel
        k = jnp.pad(k, ((0, 0), (0, Nk_p - Nk), (0, 0)))
        v = jnp.pad(v, ((0, 0), (0, Nk_p - Nk), (0, 0)))
    nk_valid = Nk if Nk_p != Nk else None

    grid = (BH, Nq_p // tq, Nk_p // tk)
    kernel = partial(_flash_attn_kernel, scale=scale, tk=tk, nk_valid=nk_valid)

    out = pl.pallas_call(
        kernel,
        out_shape=jax.ShapeDtypeStruct((BH, Nq_p, D), q.dtype),
        grid_spec=pltpu.PrefetchScalarGridSpec(
            num_scalar_prefetch=0, grid=grid,
            in_specs=[
                pl.BlockSpec((1, tq, D), lambda b, qi, ki: (b, qi, 0)),
                _kv_block_spec(tk, D),
                _kv_block_spec(tk, D),
            ],
            out_specs=pl.BlockSpec((1, tq, D), lambda b, qi, ki: (b, qi, 0)),
            scratch_shapes=[
                pltpu.VMEM((tq, 1), jnp.float32),   # running max m
                pltpu.VMEM((tq, 1), jnp.float32),   # running sum l
                pltpu.VMEM((tq, D), jnp.float32),   # output accumulator
            ]),
        compiler_params=pltpu.CompilerParams(
            # B*h leads as "parallel" so both v7x TensorCores are fed whenever
            # B*h >= 2; the KV reduction stays "arbitrary"/innermost.
            dimension_semantics=("parallel", "parallel", "arbitrary"),
            vmem_limit_bytes=_vmem_limit_bytes()),
    )(q, k, v)

    if Nq_p != Nq:
        out = out[:, :Nq, :]
    return out


# ---------------------------------------------------------------------------
# Module-equivalent forward
# ---------------------------------------------------------------------------
class AttentionPallas:
    def __init__(self, query_dim, context_dim=None, heads=8, dim_head=64,
                 key=None):
        inner_dim = dim_head * heads
        context_dim = query_dim if context_dim is None else context_dim
        self.scale = dim_head ** (-0.5)
        self.heads = heads
        self.dim_head = dim_head

        key = jax.random.PRNGKey(0) if key is None else key
        k_q, k_k, k_v, k_o, k_ob = jax.random.split(key, 5)

        # PyTorch Linear default init: U(-1/sqrt(fan_in), 1/sqrt(fan_in))
        def uni(k, shape, fan_in):
            bound = 1.0 / math.sqrt(fan_in)
            return jax.random.uniform(k, shape, jnp.float32, -bound, bound)

        # Stored as (in_features, out_features) so forward is x @ W.
        # to_kv's (K|V) halves are kept as two separate weights so the fused
        # projection can emit k and v as separate pallas outputs.
        self.w_q = uni(k_q, (query_dim, inner_dim), query_dim)
        self.w_k = uni(k_k, (context_dim, inner_dim), context_dim)
        self.w_v = uni(k_v, (context_dim, inner_dim), context_dim)
        self.w_out = uni(k_o, (inner_dim, query_dim), inner_dim)
        self.b_out = uni(k_ob, (query_dim,), inner_dim)

    def __call__(self, x, context=None, mask=None):
        if mask is not None:
            # TODO(synk): optional boolean mask path not implemented.
            raise NotImplementedError("mask is not supported")

        B, Nq, _ = x.shape
        h, d = self.heads, self.dim_head
        inner = h * d

        if context is None:
            # Self-attention: ONE pass over x; q/k/v come out as separate
            # arrays directly from the pallas_call (no wrapper slicing).
            q, kk, v = pallas_multi_linear(x.reshape(B * Nq, -1),
                                           [self.w_q, self.w_k, self.w_v])
            Nk = Nq
        else:
            Nk = context.shape[1]
            (q,) = pallas_multi_linear(x.reshape(B * Nq, -1), [self.w_q])
            kk, v = pallas_multi_linear(context.reshape(B * Nk, -1),
                                        [self.w_k, self.w_v])

        # rearrange 'b n (h d) -> (b h) n d'
        # TODO(synk): still a wrapper-side XLA reshape/transpose; indexing
        # heads straight from the (B, N, h*d) layout via BlockSpec needs a
        # 128-lane-aligned head slice (dim_head=128 or packed head pairs).
        def split_heads(t, n):
            return t.reshape(B, n, h, d).transpose(0, 2, 1, 3).reshape(B * h, n, d)

        qh = split_heads(q.reshape(B, Nq, inner), Nq)
        kh = split_heads(kk.reshape(B, Nk, inner), Nk)
        vh = split_heads(v.reshape(B, Nk, inner), Nk)

        out = pallas_flash_attention(qh, kh, vh, self.scale)  # (B*h, Nq, d)

        # rearrange '(b h) n d -> b n (h d)'
        out = out.reshape(B, h, Nq, d).transpose(0, 2, 1, 3).reshape(B * Nq, inner)
        (out,) = pallas_multi_linear(out, [self.w_out], bs=[self.b_out])
        return out.reshape(B, Nq, -1)


# ---------------------------------------------------------------------------
# Pure-JAX reference (for verification)
# ---------------------------------------------------------------------------
def reference_forward(mod, x, context=None):
    B, Nq, _ = x.shape
    context = x if context is None else context
    _, Nk, _ = context.shape
    h, d = mod.heads, mod.dim_head

    q = x @ mod.w_q
    k = context @ mod.w_k
    v = context @ mod.w_v

    def split_heads(t, n):
        return t.reshape(B, n, h, d).transpose(0, 2, 1, 3).reshape(B * h, n, d)

    qh, kh, vh = split_heads(q, Nq), split_heads(k, Nk), split_heads(v, Nk)
    sim = jnp.einsum("bid,bjd->bij", qh, kh) * mod.scale
    attn = jax.nn.softmax(sim, axis=-1)
    out = jnp.einsum("bij,bjd->bid", attn, vh)
    out = out.reshape(B, h, Nq, d).transpose(0, 2, 1, 3).reshape(B, Nq, h * d)
    return out @ mod.w_out + mod.b_out


# ---------------------------------------------------------------------------
if __name__ == "__main__":
    key = jax.random.PRNGKey(0)
    k_x, k_ctx, k_params = jax.random.split(key, 3)

    B, N, query_dim = 2, 8, 32
    heads, dim_head = 4, 8

    x = jax.random.normal(k_x, (B, N, query_dim), jnp.float32)
    mod = AttentionPallas(query_dim, heads=heads, dim_head=dim_head, key=k_params)

    # Self-attention path (single fused pass over x for q/k/v).
    out = jax.block_until_ready(mod(x))
    ref = reference_forward(mod, x)
    # Tolerance accounts for bf16 MXU operands (f32 accumulation) vs the
    # all-f32 reference.
    np.testing.assert_allclose(np.asarray(out), np.asarray(ref),
                               atol=2e-2, rtol=2e-2)

    # Cross-attention path with Nk=12 (not a tile multiple -> exercises the
    # padded-key masking branch of the flash kernel).
    ctx = jax.random.normal(k_ctx, (B, 12, query_dim), jnp.float32)
    out_c = jax.block_until_ready(mod(x, ctx))
    ref_c = reference_forward(mod, x, ctx)
    np.testing.assert_allclose(np.asarray(out_c), np.asarray(ref_c),
                               atol=2e-2, rtol=2e-2)

    print("KERNEL_OK")
</pallas_src>

<mosaic_0001>
module attributes {stable_mosaic.version = 11 : i64} {
  func.func @kernel(%arg0: i32, %arg1: i32, %arg2: i32, %arg3: memref<16x128xf32, #tpu.memory_space<vmem>>, %arg4: memref<128x128xf32, #tpu.memory_space<vmem>>, %arg5: memref<128x128xf32, #tpu.memory_space<vmem>>, %arg6: memref<128x128xf32, #tpu.memory_space<vmem>>, %arg7: memref<16x128xf32, #tpu.memory_space<vmem>>, %arg8: memref<16x128xf32, #tpu.memory_space<vmem>>, %arg9: memref<16x128xf32, #tpu.memory_space<vmem>>, %arg10: memref<16x128xf32, #tpu.memory_space<vmem>>, %arg11: memref<16x128xf32, #tpu.memory_space<vmem>>, %arg12: memref<16x128xf32, #tpu.memory_space<vmem>>) attributes {dimension_semantics = [#tpu.dimension_semantics<parallel>, #tpu.dimension_semantics<parallel>, #tpu.dimension_semantics<arbitrary>], iteration_bounds = array<i64: 1, 1, 1>, scalar_prefetch = 0 : i64, scratch_operands = 3 : i64, tpu.core_type = #tpu.core_type<tc>, window_params = [{transform_indices = @transform_0, window_bounds = array<i64: 16, 128>}, {transform_indices = @transform_1, window_bounds = array<i64: 128, 128>}, {transform_indices = @transform_2, window_bounds = array<i64: 128, 128>}, {transform_indices = @transform_3, window_bounds = array<i64: 128, 128>}, {transform_indices = @transform_4, window_bounds = array<i64: 16, 128>}, {transform_indices = @transform_5, window_bounds = array<i64: 16, 128>}, {transform_indices = @transform_6, window_bounds = array<i64: 16, 128>}]} {
    %c0_i32 = arith.constant 0 : i32
    %0 = arith.cmpi eq, %arg2, %c0_i32 : i32
    %1 = arith.extui %0 : i1 to i32
    %c0_i32_0 = arith.constant 0 : i32
    %2 = arith.cmpi ne, %1, %c0_i32_0 : i32
    scf.if %2 {
      %cst_24 = arith.constant 0.000000e+00 : f32
      %26 = vector.broadcast %cst_24 : f32 to vector<16x128xf32>
      %c0_25 = arith.constant 0 : index
      %c0_26 = arith.constant 0 : index
      %27 = vector.load %arg10[%c0_25, %c0_26] : memref<16x128xf32, #tpu.memory_space<vmem>>, vector<16x128xf32>
      tpu.vector_store %arg10[%c0_25, %c0_26], %26 {strides = array<i32>} : memref<16x128xf32, #tpu.memory_space<vmem>>, vector<16x128xf32>,
      %cst_27 = arith.constant 0.000000e+00 : f32
      %28 = vector.broadcast %cst_27 : f32 to vector<16x128xf32>
      %c0_28 = arith.constant 0 : index
      %c0_29 = arith.constant 0 : index
      %29 = vector.load %arg11[%c0_28, %c0_29] : memref<16x128xf32, #tpu.memory_space<vmem>>, vector<16x128xf32>
      tpu.vector_store %arg11[%c0_28, %c0_29], %28 {strides = array<i32>} : memref<16x128xf32, #tpu.memory_space<vmem>>, vector<16x128xf32>,
      %cst_30 = arith.constant 0.000000e+00 : f32
      %30 = vector.broadcast %cst_30 : f32 to vector<16x128xf32>
      %c0_31 = arith.constant 0 : index
      %c0_32 = arith.constant 0 : index
      %31 = vector.load %arg12[%c0_31, %c0_32] : memref<16x128xf32, #tpu.memory_space<vmem>>, vector<16x128xf32>
      tpu.vector_store %arg12[%c0_31, %c0_32], %30 {strides = array<i32>} : memref<16x128xf32, #tpu.memory_space<vmem>>, vector<16x128xf32>,
    } else {
    }
    %c0 = arith.constant 0 : index
    %c0_1 = arith.constant 0 : index
    %3 = vector.load %arg3[%c0, %c0_1] : memref<16x128xf32, #tpu.memory_space<vmem>>, vector<16x128xf32>
    %4 = arith.truncf %3 : vector<16x128xf32> to vector<16x128xbf16>
    %c0_2 = arith.constant 0 : index
    %c0_3 = arith.constant 0 : index
    %5 = vector.load %arg10[%c0_2, %c0_3] : memref<16x128xf32, #tpu.memory_space<vmem>>, vector<16x128xf32>
    %c0_4 = arith.constant 0 : index
    %c0_5 = arith.constant 0 : index
    %6 = vector.load %arg4[%c0_4, %c0_5] : memref<128x128xf32, #tpu.memory_space<vmem>>, vector<128x128xf32>
    %7 = arith.truncf %6 : vector<128x128xf32> to vector<128x128xbf16>
    %cst = arith.constant dense<0.000000e+00> : vector<16x128xf32>
    %8 = tpu.matmul %4, %7, %cst {dimension_numbers = #tpu.dot_dimension_numbers<[1], [0], [0], [1], [0, 0, 1, 1], [], []>} : vector<16x128xbf16>, vector<128x128xbf16>, vector<16x128xf32> -> vector<16x128xf32>
    %9 = arith.addf %5, %8 : vector<16x128xf32>
    %c0_6 = arith.constant 0 : index
    %c0_7 = arith.constant 0 : index
    %10 = vector.load %arg10[%c0_6, %c0_7] : memref<16x128xf32, #tpu.memory_space<vmem>>, vector<16x128xf32>
    tpu.vector_store %arg10[%c0_6, %c0_7], %9 {strides = array<i32>} : memref<16x128xf32, #tpu.memory_space<vmem>>, vector<16x128xf32>,
    %c0_8 = arith.constant 0 : index
    %c0_9 = arith.constant 0 : index
    %11 = vector.load %arg11[%c0_8, %c0_9] : memref<16x128xf32, #tpu.memory_space<vmem>>, vector<16x128xf32>
    %c0_10 = arith.constant 0 : index
    %c0_11 = arith.constant 0 : index
    %12 = vector.load %arg5[%c0_10, %c0_11] : memref<128x128xf32, #tpu.memory_space<vmem>>, vector<128x128xf32>
    %13 = arith.truncf %12 : vector<128x128xf32> to vector<128x128xbf16>
    %cst_12 = arith.constant dense<0.000000e+00> : vector<16x128xf32>
    %14 = tpu.matmul %4, %13, %cst_12 {dimension_numbers = #tpu.dot_dimension_numbers<[1], [0], [0], [1], [0, 0, 1, 1], [], []>} : vector<16x128xbf16>, vector<128x128xbf16>, vector<16x128xf32> -> vector<16x128xf32>
    %15 = arith.addf %11, %14 : vector<16x128xf32>
    %c0_13 = arith.constant 0 : index
    %c0_14 = arith.constant 0 : index
    %16 = vector.load %arg11[%c0_13, %c0_14] : memref<16x128xf32, #tpu.memory_space<vmem>>, vector<16x128xf32>
    tpu.vector_store %arg11[%c0_13, %c0_14], %15 {strides = array<i32>} : memref<16x128xf32, #tpu.memory_space<vmem>>, vector<16x128xf32>,
    %c0_15 = arith.constant 0 : index
    %c0_16 = arith.constant 0 : index
    %17 = vector.load %arg12[%c0_15, %c0_16] : memref<16x128xf32, #tpu.memory_space<vmem>>, vector<16x128xf32>
    %c0_17 = arith.constant 0 : index
    %c0_18 = arith.constant 0 : index
    %18 = vector.load %arg6[%c0_17, %c0_18] : memref<128x128xf32, #tpu.memory_space<vmem>>, vector<128x128xf32>
    %19 = arith.truncf %18 : vector<128x128xf32> to vector<128x128xbf16>
    %cst_19 = arith.constant dense<0.000000e+00> : vector<16x128xf32>
    %20 = tpu.matmul %4, %19, %cst_19 {dimension_numbers = #tpu.dot_dimension_numbers<[1], [0], [0], [1], [0, 0, 1, 1], [], []>} : vector<16x128xbf16>, vector<128x128xbf16>, vector<16x128xf32> -> vector<16x128xf32>
    %21 = arith.addf %17, %20 : vector<16x128xf32>
    %c0_20 = arith.constant 0 : index
    %c0_21 = arith.constant 0 : index
    %22 = vector.load %arg12[%c0_20, %c0_21] : memref<16x128xf32, #tpu.memory_space<vmem>>, vector<16x128xf32>
    tpu.vector_store %arg12[%c0_20, %c0_21], %21 {strides = array<i32>} : memref<16x128xf32, #tpu.memory_space<vmem>>, vector<16x128xf32>,
    %c0_i32_22 = arith.constant 0 : i32
    %23 = arith.cmpi eq, %arg2, %c0_i32_22 : i32
    %24 = arith.extui %23 : i1 to i32
    %c0_i32_23 = arith.constant 0 : i32
    %25 = arith.cmpi ne, %24, %c0_i32_23 : i32
    scf.if %25 {
      %c0_24 = arith.constant 0 : index
      %c0_25 = arith.constant 0 : index
      %26 = vector.load %arg10[%c0_24, %c0_25] : memref<16x128xf32, #tpu.memory_space<vmem>>, vector<16x128xf32>
      %c0_26 = arith.constant 0 : index
      %c0_27 = arith.constant 0 : index
      %27 = vector.load %arg7[%c0_26, %c0_27] : memref<16x128xf32, #tpu.memory_space<vmem>>, vector<16x128xf32>
      tpu.vector_store %arg7[%c0_26, %c0_27], %26 {strides = array<i32>} : memref<16x128xf32, #tpu.memory_space<vmem>>, vector<16x128xf32>,
      %c0_28 = arith.constant 0 : index
      %c0_29 = arith.constant 0 : index
      %28 = vector.load %arg11[%c0_28, %c0_29] : memref<16x128xf32, #tpu.memory_space<vmem>>, vector<16x128xf32>
      %c0_30 = arith.constant 0 : index
      %c0_31 = arith.constant 0 : index
      %29 = vector.load %arg8[%c0_30, %c0_31] : memref<16x128xf32, #tpu.memory_space<vmem>>, vector<16x128xf32>
      tpu.vector_store %arg8[%c0_30, %c0_31], %28 {strides = array<i32>} : memref<16x128xf32, #tpu.memory_space<vmem>>, vector<16x128xf32>,
      %c0_32 = arith.constant 0 : index
      %c0_33 = arith.constant 0 : index
      %30 = vector.load %arg12[%c0_32, %c0_33] : memref<16x128xf32, #tpu.memory_space<vmem>>, vector<16x128xf32>
      %c0_34 = arith.constant 0 : index
      %c0_35 = arith.constant 0 : index
      %31 = vector.load %arg9[%c0_34, %c0_35] : memref<16x128xf32, #tpu.memory_space<vmem>>, vector<16x128xf32>
      tpu.vector_store %arg9[%c0_34, %c0_35], %30 {strides = array<i32>} : memref<16x128xf32, #tpu.memory_space<vmem>>, vector<16x128xf32>,
    } else {
    }
    return
  }
  func.func @transform_0(%arg0: i32, %arg1: i32, %arg2: i32) -> (i32, i32) {
    %c0_i32 = arith.constant 0 : i32
    return %arg0, %arg2 : i32, i32
  }
  func.func @transform_1(%arg0: i32, %arg1: i32, %arg2: i32) -> (i32, i32) {
    %c0_i32 = arith.constant 0 : i32
    return %arg2, %arg1 : i32, i32
  }
  func.func @transform_2(%arg0: i32, %arg1: i32, %arg2: i32) -> (i32, i32) {
    %c0_i32 = arith.constant 0 : i32
    return %arg2, %arg1 : i32, i32
  }
  func.func @transform_3(%arg0: i32, %arg1: i32, %arg2: i32) -> (i32, i32) {
    %c0_i32 = arith.constant 0 : i32
    return %arg2, %arg1 : i32, i32
  }
  func.func @transform_4(%arg0: i32, %arg1: i32, %arg2: i32) -> (i32, i32) {
    %c0_i32 = arith.constant 0 : i32
    return %arg0, %arg1 : i32, i32
  }
  func.func @transform_5(%arg0: i32, %arg1: i32, %arg2: i32) -> (i32, i32) {
    %c0_i32 = arith.constant 0 : i32
    return %arg0, %arg1 : i32, i32
  }
  func.func @transform_6(%arg0: i32, %arg1: i32, %arg2: i32) -> (i32, i32) {
    %c0_i32 = arith.constant 0 : i32
    return %arg0, %arg1 : i32, i32
  }
}

</mosaic_0001>

<bundles_post_ra>
// kernel: tpu_custom_call.1
= control target key start
LH: loop header
LB: loop body
LE: loop exit
PB: predicated region body
PF: predicated region fallthrough
CT: control target
= control target key end

     0   :  { %12 = vsyncpa [#allocation6], 0  ;;  %s574_s0 = inlined_call_operand.hbm [shape: f32[16,128], index: 0, kind: input, shape index: {}]   ;;  %s575_s1 = inlined_call_operand.hbm [shape: f32[128,128], index: 1, kind: input, shape index: {}]   ;;  %s576_s2 = inlined_call_operand.hbm [shape: f32[128,128], index: 2, kind: input, shape index: {}]   ;;  %s577_s3 = inlined_call_operand.hbm [shape: f32[128,128], index: 3, kind: input, shape index: {}]   ;;  %s578_s4 = inlined_call_operand.hbm [shape: f32[16,128], index: 4, kind: output, shape index: {0}]   ;;  %s579_s5 = inlined_call_operand.hbm [shape: f32[16,128], index: 5, kind: output, shape index: {1}]   ;;  %s580_s6 = inlined_call_operand.hbm [shape: f32[16,128], index: 6, kind: output, shape index: {2}]  }
   0x1   :  { %13 = vsyncpa [#allocation9], 0 }
   0x2   :  { %14 = vsyncpa [#allocation12], 0 }
   0x3   :  { %15 = vsyncpa [#allocation7], 0 }
   0x4   :  { %16 = vsyncpa [#allocation15], 0  ;;  %s34_s23 = sshll.u32 %s575_s1, 4  ;;  %s488_s24 = smov [#allocation8]   ;;  %s35_s23 = int_to_ptr.hbm [resolvable:$true] %s34_s23 }
   0x5   :  { %s36_s25 = sshll.u32 %s488_s24, 4  ;;  %s21_s28 = sshll.u32 %s574_s0, 4  ;;  %s37_s25 = int_to_ptr.vmem [resolvable:$true] %s36_s25  ;;  %s22_s28 = int_to_ptr.hbm [resolvable:$true] %s21_s28 }
   0x6   :  { %s489_s29 = smov 128   ;;  %s490_s30 = smov 8  }
   0x7   :  { %42 = dma.hbm_to_vmem [thread:$0]  %s35_s23, 2048, %s37_s25, [#allocation9], %s489_s29, %s489_s29, %s490_s30  }
   0x8   :  { %s491_s7 = smov [#allocation5]   ;;  %s47_s1 = sshll.u32 %s576_s2, 4  ;;  %s48_s1 = int_to_ptr.hbm [resolvable:$true] %s47_s1 }
   0x9   :  { %s23_s8 = sshll.u32 %s491_s7, 4  ;;  %s60_s12 = sshll.u32 %s577_s3, 4  ;;  %s24_s8 = int_to_ptr.vmem [resolvable:$true] %s23_s8  ;;  %s61_s12 = int_to_ptr.hbm [resolvable:$true] %s60_s12 }
   0xa   :  { %29 = dma.hbm_to_vmem [thread:$0]  %s22_s28, 256, %s24_s8, [#allocation6], %s489_s29, %s489_s29, %s490_s30  }
   0xb   :  { %s492_s13 = smov [#allocation10]   ;;  %s493_s15 = smov [#allocation11]  }
   0xc   :  { %s49_s14 = sshll.u32 %s492_s13, 4  ;;  %s62_s2 = sshll.u32 %s493_s15, 4  ;;  %s50_s14 = int_to_ptr.vmem [resolvable:$true] %s49_s14  ;;  %s63_s2 = int_to_ptr.vmem [resolvable:$true] %s62_s2 }
   0xd   :  { %55 = dma.hbm_to_vmem [thread:$0]  %s48_s1, 2048, %s50_s14, [#allocation9], %s489_s29, %s489_s29, %s490_s30  }
   0xe   :  { %68 = dma.hbm_to_vmem [thread:$0]  %s61_s12, 2048, %s63_s2, [#allocation12], %s489_s29, %s489_s29, %s490_s30  }
   0xf   :  { %478 = dma.done.wait [#allocation6], 256  }
  0x10   :  { %479 = vsyncadd [#allocation6], 4294967040 }
  0x11   :  { %480 = dma.done.wait [#allocation9], 4096  }
  0x12   :  { %481 = vsyncadd [#allocation9], 4294963200 }
  0x13   :  { %482 = dma.done.wait [#allocation12], 2048  }
  0x14   :  { %483 = vsyncadd [#allocation12], 4294965248  ;;  %v114_v0 = vld [vmem:[#allocation8 + $0x70] sm:$0xff]  ;;  %v115_v1 = vld [vmem:[#allocation8 + $0x78] sm:$0xff]  ;;  %s494_s3 = smov [#allocation13]   ;;  %s251_s19 = sshll.u32 %s578_s4, 4  ;;  %s252_s19 = int_to_ptr.hbm [resolvable:$true] %s251_s19 }
  0x15   :  { %v158_v2 = vld [vmem:[#allocation10 + $0x70] sm:$0xff]  ;;  %v123_v3 = vpack.c.bf16 %v115_v1, %v114_v0  ;;  %v159_v4 = vld [vmem:[#allocation10 + $0x78] sm:$0xff]  ;;  %v112_v9 = vld [vmem:[#allocation8 + $0x60] sm:$0xff]  ;;  %s249_s16 = sshll.u32 %s494_s3, 4  ;;  %s495_s20 = smov [#allocation14]   ;;  %s250_s16 = int_to_ptr.vmem [resolvable:$true] %s249_s16 }
  0x16   :  { %v202_v5 = vld [vmem:[#allocation11 + $0x70] sm:$0xff]  ;;  %v203_v6 = vld [vmem:[#allocation11 + $0x78] sm:$0xff]  ;;  %v167_v7 = vpack.c.bf16 %v159_v4, %v158_v2  ;;  %v113_v10 = vld [vmem:[#allocation8 + $0x68] sm:$0xff]  ;;  %s262_s21 = sshll.u32 %s495_s20, 4  ;;  %s264_s24 = sshll.u32 %s579_s5, 4  ;;  %s263_s21 = int_to_ptr.vmem [resolvable:$true] %s262_s21  ;;  %s265_s24 = int_to_ptr.hbm [resolvable:$true] %s264_s24 }
  0x17   :  { %v211_v8 = vpack.c.bf16 %v203_v6, %v202_v5  ;;  %v156_v11 = vld [vmem:[#allocation10 + $0x60] sm:$0xff]  ;;  %124 = vmatpush.bf16.msra.mxu0 %v123_v3  ;;  %v122_v12 = vpack.c.bf16 %v113_v10, %v112_v9  ;;  %v157_v13 = vld [vmem:[#allocation10 + $0x68] sm:$0xff]  ;;  %v110_v18 = vld [vmem:[#allocation8 + $0x50] sm:$0xff]  ;;  %s496_s25 = smov [#allocation16]   ;;  %s277_s4 = sshll.u32 %s580_s6, 4  ;;  %s278_s4 = int_to_ptr.hbm [resolvable:$true] %s277_s4 }
  0x18   :  { %v200_v14 = vld [vmem:[#allocation11 + $0x60] sm:$0xff]  ;;  %v201_v15 = vld [vmem:[#allocation11 + $0x68] sm:$0xff]  ;;  %168 = vmatpush.bf16.msra.mxu1 %v167_v7  ;;  %v166_v16 = vpack.c.bf16 %v157_v13, %v156_v11  ;;  %v111_v19 = vld [vmem:[#allocation8 + $0x58] sm:$0xff]  ;;  %s275_s26 = sshll.u32 %s496_s25, 4  ;;  %s276_s26 = int_to_ptr.vmem [resolvable:$true] %s275_s26 }
  0x19   :  { %212 = vmatpush.bf16.msra.mxu2 %v211_v8  ;;  %v210_v17 = vpack.c.bf16 %v201_v15, %v200_v14  ;;  %v154_v20 = vld [vmem:[#allocation10 + $0x50] sm:$0xff]  ;;  %v155_v21 = vld [vmem:[#allocation10 + $0x58] sm:$0xff]  ;;  %v121_v24 = vpack.c.bf16 %v111_v19, %v110_v18  ;;  %v108_v27 = vld [vmem:[#allocation8 + $0x40] sm:$0xff] }
  0x1a   :  { %v198_v22 = vld [vmem:[#allocation11 + $0x50] sm:$0xff]  ;;  %v199_v23 = vld [vmem:[#allocation11 + $0x58] sm:$0xff]  ;;  %v165_v25 = vpack.c.bf16 %v155_v21, %v154_v20  ;;  %v109_v28 = vld [vmem:[#allocation8 + $0x48] sm:$0xff] }
  0x1b   :  { %125 = vmatpush.bf16.msra.mxu0 %v122_v12  ;;  %v209_v26 = vpack.c.bf16 %v199_v23, %v198_v22  ;;  %v152_v29 = vld [vmem:[#allocation10 + $0x40] sm:$0xff]  ;;  %v153_v30 = vld [vmem:[#allocation10 + $0x48] sm:$0xff]  ;;  %v120_v33 = vpack.c.bf16 %v109_v28, %v108_v27  ;;  %v106_v36 = vld [vmem:[#allocation8 + $0x30] sm:$0xff] }
  0x1c   :  { %169 = vmatpush.bf16.msra.mxu1 %v166_v16  ;;  %v196_v31 = vld [vmem:[#allocation11 + $0x40] sm:$0xff]  ;;  %v197_v32 = vld [vmem:[#allocation11 + $0x48] sm:$0xff]  ;;  %v164_v34 = vpack.c.bf16 %v153_v30, %v152_v29  ;;  %v107_v37 = vld [vmem:[#allocation8 + $0x38] sm:$0xff] }
  0x1d   :  { %213 = vmatpush.bf16.msra.mxu2 %v210_v17  ;;  %v208_v35 = vpack.c.bf16 %v197_v32, %v196_v31  ;;  %v150_v38 = vld [vmem:[#allocation10 + $0x30] sm:$0xff]  ;;  %v151_v39 = vld [vmem:[#allocation10 + $0x38] sm:$0xff]  ;;  %v119_v42 = vpack.c.bf16 %v107_v37, %v106_v36  ;;  %v104_v45 = vld [vmem:[#allocation8 + $0x20] sm:$0xff] }
  0x1e   :  { %v194_v40 = vld [vmem:[#allocation11 + $0x30] sm:$0xff]  ;;  %v195_v41 = vld [vmem:[#allocation11 + $0x38] sm:$0xff]  ;;  %v163_v43 = vpack.c.bf16 %v151_v39, %v150_v38  ;;  %v105_v46 = vld [vmem:[#allocation8 + $0x28] sm:$0xff] }
  0x1f   :  { %126 = vmatpush.bf16.msra.mxu0 %v121_v24  ;;  %v207_v44 = vpack.c.bf16 %v195_v41, %v194_v40  ;;  %v148_v47 = vld [vmem:[#allocation10 + $0x20] sm:$0xff]  ;;  %v149_v48 = vld [vmem:[#allocation10 + $0x28] sm:$0xff]  ;;  %v118_v51 = vpack.c.bf16 %v105_v46, %v104_v45  ;;  %v102_v54 = vld [vmem:[#allocation8 + $0x10] sm:$0xff] }
  0x20   :  { %170 = vmatpush.bf16.msra.mxu1 %v165_v25  ;;  %v192_v49 = vld [vmem:[#allocation11 + $0x20] sm:$0xff]  ;;  %v193_v50 = vld [vmem:[#allocation11 + $0x28] sm:$0xff]  ;;  %v162_v52 = vpack.c.bf16 %v149_v48, %v148_v47  ;;  %v103_v55 = vld [vmem:[#allocation8 + $0x18] sm:$0xff] }
  0x21   :  { %214 = vmatpush.bf16.msra.mxu2 %v209_v26  ;;  %v206_v53 = vpack.c.bf16 %v193_v50, %v192_v49  ;;  %v146_v56 = vld [vmem:[#allocation10 + $0x10] sm:$0xff]  ;;  %v147_v57 = vld [vmem:[#allocation10 + $0x18] sm:$0xff]  ;;  %v117_v60 = vpack.c.bf16 %v103_v55, %v102_v54  ;;  %v100_v63 = vld [vmem:[#allocation8] sm:$0xff] }
  0x22   :  { %v190_v58 = vld [vmem:[#allocation11 + $0x10] sm:$0xff]  ;;  %v191_v59 = vld [vmem:[#allocation11 + $0x18] sm:$0xff]  ;;  %v161_v61 = vpack.c.bf16 %v147_v57, %v146_v56  ;;  %v101_v0 = vld [vmem:[#allocation8 + $0x8] sm:$0xff] }
  0x23   :  { %127 = vmatpush.bf16.msra.mxu0 %v120_v33  ;;  %v205_v62 = vpack.c.bf16 %v191_v59, %v190_v58  ;;  %v144_v1 = vld [vmem:[#allocation10] sm:$0xff]  ;;  %v145_v2 = vld [vmem:[#allocation10 + $0x8] sm:$0xff]  ;;  %v116_v5 = vpack.c.bf16 %v101_v0, %v100_v63  ;;  %v95_v6 = vld [vmem:[#allocation5] sm:$0xff] }
  0x24   :  { %171 = vmatpush.bf16.msra.mxu1 %v164_v34  ;;  %v188_v3 = vld [vmem:[#allocation11] sm:$0xff]  ;;  %v189_v4 = vld [vmem:[#allocation11 + $0x8] sm:$0xff]  ;;  %v96_v7 = vld [vmem:[#allocation5 + $0x8] sm:$0xff]  ;;  %v160_v8 = vpack.c.bf16 %v145_v2, %v144_v1 }
  0x25   :  { %215 = vmatpush.bf16.msra.mxu2 %v208_v35  ;;  %v204_v9 = vpack.c.bf16 %v189_v4, %v188_v3  ;;  %v97_v10 = vpack.c.bf16 %v96_v7, %v95_v6 }
  0x27   :  { %128 = vmatpush.bf16.msra.mxu0 %v119_v42 }
  0x28   :  { %172 = vmatpush.bf16.msra.mxu1 %v163_v43 }
  0x29   :  { %216 = vmatpush.bf16.msra.mxu2 %v207_v44 }
  0x2b   :  { %129 = vmatpush.bf16.msra.mxu0 %v118_v51 }
  0x2c   :  { %173 = vmatpush.bf16.msra.mxu1 %v162_v52 }
  0x2d   :  { %217 = vmatpush.bf16.msra.mxu2 %v206_v53 }
  0x2f   :  { %130 = vmatpush.bf16.msra.mxu0 %v117_v60 }
  0x30   :  { %174 = vmatpush.bf16.msra.mxu1 %v161_v61 }
  0x31   :  { %218 = vmatpush.bf16.msra.mxu2 %v205_v62 }
  0x33   :  { %131 = vmatpush.bf16.msra.mxu0 %v116_v5 }
  0x34   :  { %175 = vmatpush.bf16.msra.mxu1 %v160_v8 }
  0x35   :  { %219 = vmatpush.bf16.msra.mxu2 %v204_v9 }
  0x36   :  { %132 = vmatmul.bf16.vlgmr.msra.gmra.mxu0 %v97_v10 }
  0x37   :  { %176 = vmatmul.bf16.vlgmr.msra.gmra.mxu1 %v97_v10 }
  0x38   :  { %220 = vmatmul.bf16.vlgmr.msra.gmra.mxu2 %v97_v10 }
  0xb3   :  { %v133_v11 = vpop.f32.mrf.mxu0 }
  0xb4   :  { %235 = vst [vmem:[#allocation13] sm:$0xff] %v133_v11  ;;  %v177_v12 = vpop.f32.mrf.mxu1 }
  0xb5   :  { %239 = vst [vmem:[#allocation14] sm:$0xff] %v177_v12 }
  0xbb   :  { %v221_v13 = vpop.f32.mrf.mxu2  ;;  %v135_v14 = vpop.f32.mrf.mxu0 }
  0xbc   :  { %243 = vst [vmem:[#allocation16] sm:$0xff] %v221_v13  ;;  %v179_v15 = vpop.f32.mrf.mxu1 }
  0xbd   :  { %236 = vst [vmem:[#allocation13 + $0x8] sm:$0xff] %v135_v14 }
  0xbe   :  { %240 = vst [vmem:[#allocation14 + $0x8] sm:$0xff] %v179_v15  ;;  %257 = dma.vmem_to_hbm [thread:$0]  %s250_s16, 256, %s252_s19, [#allocation7], %s489_s29, %s489_s29, %s490_s30  }
  0xbf   :  { %270 = dma.vmem_to_hbm [thread:$0]  %s263_s21, 256, %s265_s24, [#allocation15], %s489_s29, %s489_s29, %s490_s30  }
  0xc3   :  { %v223_v16 = vpop.f32.mrf.mxu2 }
  0xc4   :  { %244 = vst [vmem:[#allocation16 + $0x8] sm:$0xff] %v223_v16 }
  0xc5   :  { %283 = dma.vmem_to_hbm [thread:$0]  %s276_s26, 256, %s278_s4, [#allocation15], %s489_s29, %s489_s29, %s490_s30  }
  0xc6   :  { %484 = dma.done.wait [#allocation7], 256  }
  0xc7   :  { %485 = vsyncadd [#allocation7], 4294967040 }
  0xc8   :  { %486 = dma.done.wait [#allocation15], 512  }
  0xc9   :  { %487 = vsyncadd [#allocation15], 4294966784 }
  0xca   :  { %296 = vsyncpa [#allocation6], 1 }
  0xcb   :  { %297 = vsyncpa [#allocation9], 1 }
  0xcc   :  { %298 = vsyncpa [#allocation12], 1 }
  0xcd   :  { %299 = vsyncpa [#allocation7], 1 }
  0xce   :  { %300 = vsyncpa [#allocation15], 1 }

</bundles_post_ra>
